<compile_context>
chip_gen: v7x
topology: tpu7x:2x2x1
jax: 0.10.0
libtpu: 0.0.40
codegen_flags: <defaults>
</compile_context>

<pallas_src>
import functools
import math

import jax
import jax.numpy as jnp
from jax import lax
from jax.experimental import pallas as pl
from jax.experimental.pallas import tpu as pltpu

KSIZE = 4
STRIDE = 2
PAD = 1
LANE = 128


def _round_up(x, m):
    return ((x + m - 1) // m) * m


def _ds_conv_kernel(w_ref, b_ref, y_ref, o_ref, *, shifts, t, precision):
    """One (frame, spatial-tile) step.

    w_ref: (4, Cout, Cin*4)      resident sub-kernel weights (one per 2x2 tap offset)
    b_ref: (Cout, 1)             resident f32 bias column
    y_ref: (1, Cin*4, t + halo)  space-to-depth input tile (lane-dense, halo included)
    o_ref: (1, Cout, t)          lane-dense output tile
    """
    acc = jnp.dot(w_ref[0], y_ref[0, :, pl.ds(shifts[0], t)],
                  preferred_element_type=jnp.float32, precision=precision)
    for s in range(1, 4):
        acc = acc + jnp.dot(w_ref[s], y_ref[0, :, pl.ds(shifts[s], t)],
                            preferred_element_type=jnp.float32, precision=precision)
    o_ref[0] = (acc + b_ref[...]).astype(o_ref.dtype)


def _vmem_budget_and_cap():
    """Per-chip VMEM capacity and a usable budget (leave headroom for compiler scratch)."""
    cap = 64 * 1024 * 1024  # conservative fallback (v7x-sized)
    try:
        info = pltpu.get_tpu_info()
        cap = int(getattr(info, "vmem_capacity_bytes", cap))
    except Exception:
        pass
    # v7x (64 MiB): ~32 MiB usable; v5e/v6e (128 MiB): ~96 MiB usable.
    budget = max(24 << 20, min(cap - (32 << 20), int(0.75 * cap)))
    return budget, cap


def _choose_spatial_tile(lo, halo, cin4, cout, in_isz, out_isz, budget):
    """Largest lane-dense spatial tile whose full VMEM footprint fits the budget."""

    def need(tt):
        return (2 * cin4 * (tt + halo) * in_isz   # input tile, double-buffered
                + 2 * cout * tt * out_isz          # output tile, double-buffered
                + 2 * 4 * cout * cin4 * in_isz     # resident weights (x2 pipeline buffers)
                + 2 * cout * 4                     # bias (x2)
                + cout * tt * 4                    # f32 accumulator
                + 2 * cin4 * tt * in_isz)          # shifted-slice temporaries

    t = min(_round_up(max(lo, 1), LANE), 8192)
    while t > LANE and need(t) > budget:
        t -= LANE
    return t, need(t)


def downsample_forward(x, weight, bias, *, compute_dtype=jnp.bfloat16, precision=None):
    """Pallas equivalent of Downsample.forward.

    x:      (B, T, Cin, H, W)
    weight: (Cout, Cin, 4, 4)   -- PyTorch Conv2d (OIHW) weight layout
    bias:   (Cout,)
    returns (B, T, Cout, Hout, Wout) with Hout=(H+2-4)//2+1, Wout likewise.
    """
    B, T, Cin, H, W = x.shape
    Cout = weight.shape[0]
    N = B * T
    Hout = (H + 2 * PAD - KSIZE) // STRIDE + 1
    Wout = (W + 2 * PAD - KSIZE) // STRIDE + 1
    Hs, Ws = Hout + 1, Wout + 1          # space-to-depth spatial dims
    Cin4 = Cin * 4
    Lo = Hout * Ws                        # output columns in padded-width (Ws) space
    halo = Ws + 1                         # extra lane columns needed for the 2x2 tap shifts
    shifts = (0, 1, Ws, Ws + 1)           # shift(ph, pw) = ph*Ws + pw, s = ph*2 + pw

    out_dtype = x.dtype
    in_isz = jnp.dtype(compute_dtype).itemsize
    out_isz = jnp.dtype(out_dtype).itemsize

    budget, cap = _vmem_budget_and_cap()
    t, need_bytes = _choose_spatial_tile(Lo, halo, Cin4, Cout, in_isz, out_isz, budget)
    n_sp = -(-Lo // t)
    # v7x megacore: guarantee >= 2 grid points when there is only one frame but enough pixels.
    if N == 1 and n_sp == 1 and Lo > LANE:
        t = max(LANE, _round_up(-(-Lo // 2), LANE))
        n_sp = -(-Lo // t)

    # ---------------- XLA glue: pad + 2x2 space-to-depth (cheap, ~1x input size) -------------
    xx = x.reshape(N, Cin, H, W).astype(compute_dtype)
    pad_b = 2 * Hs - H - PAD
    pad_r = 2 * Ws - W - PAD
    xp = jnp.pad(xx, ((0, 0), (0, 0), (PAD, pad_b), (PAD, pad_r)))
    # y[n, c*4 + rh*2 + rw, i*Ws + j] = xp[n, c, 2i + rh, 2j + rw]
    y = (xp.reshape(N, Cin, Hs, 2, Ws, 2)
           .transpose(0, 1, 3, 5, 2, 4)
           .reshape(N, Cin4, Hs * Ws))
    lpad = n_sp * t + halo
    y = jnp.pad(y, ((0, 0), (0, 0), (0, lpad - Hs * Ws)))
    if n_sp == 1:
        y_tiles = y[:, None]
    else:
        # duplicate the (tiny) halo so every spatial tile is self-contained (no cross-block halo)
        y_tiles = jnp.stack([y[:, :, j * t: j * t + t + halo] for j in range(n_sp)], axis=1)
    y_tiles = y_tiles.reshape(N * n_sp, Cin4, t + halo)

    # sub-kernel weights: w4[ph*2+pw][oc, c*4 + rh*2 + rw] = W[oc, c, 2ph+rh, 2pw+rw]
    w4 = (weight.reshape(Cout, Cin, 2, 2, 2, 2)
                .transpose(2, 4, 0, 1, 3, 5)
                .reshape(4, Cout, Cin4)
                .astype(compute_dtype))
    b_col = bias.reshape(Cout, 1).astype(jnp.float32)

    vmem_limit = need_bytes + (8 << 20)
    vmem_limit = min(vmem_limit, cap - (16 << 20))
    vmem_limit = int(max(vmem_limit, 32 << 20))

    flops = 2 * N * Hout * Wout * Cout * Cin * KSIZE * KSIZE
    bytes_accessed = int(y_tiles.size * in_isz + w4.size * in_isz + b_col.size * 4
                         + N * Cout * n_sp * t * out_isz)

    out2 = pl.pallas_call(
        functools.partial(_ds_conv_kernel, shifts=shifts, t=t, precision=precision),
        out_shape=jax.ShapeDtypeStruct((N, Cout, n_sp * t), out_dtype),
        grid=(N, n_sp),
        in_specs=[
            pl.BlockSpec((4, Cout, Cin4), lambda n, j: (0, 0, 0)),           # resident weights
            pl.BlockSpec((Cout, 1), lambda n, j: (0, 0)),                    # resident bias
            pl.BlockSpec((1, Cin4, t + halo), lambda n, j: (n * n_sp + j, 0, 0)),
        ],
        out_specs=pl.BlockSpec((1, Cout, t), lambda n, j: (n, 0, j)),
        compiler_params=pltpu.CompilerParams(
            dimension_semantics=("parallel", "parallel"),
            vmem_limit_bytes=vmem_limit,
        ),
        cost_estimate=pl.CostEstimate(
            flops=flops, transcendentals=0, bytes_accessed=bytes_accessed),
    )(w4, b_col, y_tiles)

    # Drop the ragged tail and the padded (ow == Wout) columns; pure reshape otherwise.
    out = out2[:, :, :Lo].reshape(N, Cout, Hout, Ws)[..., :Wout]
    return out.reshape(B, T, Cout, Hout, Wout)


def init_params(key, in_channel, out_channel, dtype=jnp.float32):
    """Deterministic init mimicking PyTorch Conv2d defaults (kaiming uniform, a=sqrt(5))."""
    kw, kb = jax.random.split(key)
    fan_in = in_channel * KSIZE * KSIZE
    bound = 1.0 / math.sqrt(fan_in)
    weight = jax.random.uniform(
        kw, (out_channel, in_channel, KSIZE, KSIZE), dtype=dtype, minval=-bound, maxval=bound)
    bias = jax.random.uniform(
        kb, (out_channel,), dtype=dtype, minval=-bound, maxval=bound)
    return weight, bias


def _reference_forward(x, weight, bias):
    """Pure-JAX (XLA conv) reference for Conv2d(k=4, s=2, p=1) applied per frame."""
    B, T, Cin, H, W = x.shape
    Cout = weight.shape[0]
    Hout = (H + 2 * PAD - KSIZE) // STRIDE + 1
    Wout = (W + 2 * PAD - KSIZE) // STRIDE + 1
    xx = x.reshape(B * T, Cin, H, W)
    y = lax.conv_general_dilated(
        xx, weight,
        window_strides=(STRIDE, STRIDE),
        padding=((PAD, PAD), (PAD, PAD)),
        dimension_numbers=("NCHW", "OIHW", "NCHW"),
        precision=lax.Precision.HIGHEST)
    y = y + bias[None, :, None, None]
    return y.reshape(B, T, Cout, Hout, Wout)


if __name__ == "__main__":
    key = jax.random.PRNGKey(0)
    k_x, k_p = jax.random.split(key)

    B, T, Cin, Cout, H, W = 2, 2, 4, 8, 16, 16
    x = jax.random.normal(k_x, (B, T, Cin, H, W), dtype=jnp.float32)
    weight, bias = init_params(k_p, Cin, Cout)

    ref = _reference_forward(x, weight, bias)

    # Exact-path check: f32 operands + HIGHEST precision -> tight tolerance.
    out_f32 = downsample_forward(x, weight, bias,
                                 compute_dtype=jnp.float32,
                                 precision=lax.Precision.HIGHEST)
    out_f32 = jax.block_until_ready(out_f32)
    assert out_f32.shape == (B, T, Cout, H // 2, W // 2), out_f32.shape
    assert jnp.allclose(out_f32, ref, atol=1e-4, rtol=1e-4), "f32 mismatch vs reference"

    # Default fast path: bf16 operands, DEFAULT precision, f32 accumulation.
    out_fast = downsample_forward(x, weight, bias)
    out_fast = jax.block_until_ready(out_fast)
    assert out_fast.shape == (B, T, Cout, H // 2, W // 2), out_fast.shape
    assert jnp.allclose(out_fast, ref, atol=5e-2, rtol=5e-2), "bf16 mismatch vs reference"

    print("KERNEL_OK")
</pallas_src>

<mosaic_0001>
module attributes {stable_mosaic.version = 11 : i64} {
  func.func @_ds_conv_kernel(%arg0: i32, %arg1: i32, %arg2: memref<4x8x16xf32, #tpu.memory_space<vmem>>, %arg3: memref<8x1xf32, #tpu.memory_space<vmem>>, %arg4: memref<1x16x138xf32, #tpu.memory_space<vmem>>, %arg5: memref<1x8x128xf32, #tpu.memory_space<vmem>>) attributes {dimension_semantics = [#tpu.dimension_semantics<parallel>, #tpu.dimension_semantics<parallel>], iteration_bounds = array<i64: 4, 1>, scalar_prefetch = 0 : i64, scratch_operands = 0 : i64, tpu.core_type = #tpu.core_type<tc>, window_params = [{pipeline_mode = #tpu.pipeline_mode<synchronous>, transform_indices = @transform_0, window_bounds = array<i64: 4, 8, 16>}, {pipeline_mode = #tpu.pipeline_mode<synchronous>, transform_indices = @transform_1, window_bounds = array<i64: 8, 1>}, {transform_indices = @transform_2, window_bounds = array<i64: 1, 16, 138>}, {transform_indices = @transform_3, window_bounds = array<i64: 1, 8, 128>}]} {
    %c0 = arith.constant 0 : index
    %c0_0 = arith.constant 0 : index
    %c0_1 = arith.constant 0 : index
    %0 = vector.load %arg2[%c0, %c0_0, %c0_1] : memref<4x8x16xf32, #tpu.memory_space<vmem>>, vector<1x8x16xf32>
    %1 = vector.shape_cast %0 : vector<1x8x16xf32> to vector<8x16xf32>
    %c0_2 = arith.constant 0 : index
    %c0_3 = arith.constant 0 : index
    %c0_4 = arith.constant 0 : index
    %2 = vector.load %arg4[%c0_2, %c0_3, %c0_4] : memref<1x16x138xf32, #tpu.memory_space<vmem>>, vector<1x16x128xf32>
    %3 = vector.shape_cast %2 : vector<1x16x128xf32> to vector<16x128xf32>
    %cst = arith.constant dense<0.000000e+00> : vector<8x128xf32>
    %4 = tpu.matmul %1, %3, %cst {dimension_numbers = #tpu.dot_dimension_numbers<[1], [0], [0], [1], [0, 0, 1, 1], [], []>, precision = #tpu.contract_precision<fp32>} : vector<8x16xf32>, vector<16x128xf32>, vector<8x128xf32> -> vector<8x128xf32>
    %c1 = arith.constant 1 : index
    %c0_5 = arith.constant 0 : index
    %c0_6 = arith.constant 0 : index
    %5 = vector.load %arg2[%c1, %c0_5, %c0_6] : memref<4x8x16xf32, #tpu.memory_space<vmem>>, vector<1x8x16xf32>
    %6 = vector.shape_cast %5 : vector<1x8x16xf32> to vector<8x16xf32>
    %c0_7 = arith.constant 0 : index
    %c0_8 = arith.constant 0 : index
    %c1_9 = arith.constant 1 : index
    %7 = vector.load %arg4[%c0_7, %c0_8, %c1_9] : memref<1x16x138xf32, #tpu.memory_space<vmem>>, vector<1x16x128xf32>
    %8 = vector.shape_cast %7 : vector<1x16x128xf32> to vector<16x128xf32>
    %cst_10 = arith.constant dense<0.000000e+00> : vector<8x128xf32>
    %9 = tpu.matmul %6, %8, %cst_10 {dimension_numbers = #tpu.dot_dimension_numbers<[1], [0], [0], [1], [0, 0, 1, 1], [], []>, precision = #tpu.contract_precision<fp32>} : vector<8x16xf32>, vector<16x128xf32>, vector<8x128xf32> -> vector<8x128xf32>
    %10 = arith.addf %4, %9 : vector<8x128xf32>
    %c2 = arith.constant 2 : index
    %c0_11 = arith.constant 0 : index
    %c0_12 = arith.constant 0 : index
    %11 = vector.load %arg2[%c2, %c0_11, %c0_12] : memref<4x8x16xf32, #tpu.memory_space<vmem>>, vector<1x8x16xf32>
    %12 = vector.shape_cast %11 : vector<1x8x16xf32> to vector<8x16xf32>
    %c0_13 = arith.constant 0 : index
    %c0_14 = arith.constant 0 : index
    %c9 = arith.constant 9 : index
    %13 = vector.load %arg4[%c0_13, %c0_14, %c9] : memref<1x16x138xf32, #tpu.memory_space<vmem>>, vector<1x16x128xf32>
    %14 = vector.shape_cast %13 : vector<1x16x128xf32> to vector<16x128xf32>
    %cst_15 = arith.constant dense<0.000000e+00> : vector<8x128xf32>
    %15 = tpu.matmul %12, %14, %cst_15 {dimension_numbers = #tpu.dot_dimension_numbers<[1], [0], [0], [1], [0, 0, 1, 1], [], []>, precision = #tpu.contract_precision<fp32>} : vector<8x16xf32>, vector<16x128xf32>, vector<8x128xf32> -> vector<8x128xf32>
    %16 = arith.addf %10, %15 : vector<8x128xf32>
    %c3 = arith.constant 3 : index
    %c0_16 = arith.constant 0 : index
    %c0_17 = arith.constant 0 : index
    %17 = vector.load %arg2[%c3, %c0_16, %c0_17] : memref<4x8x16xf32, #tpu.memory_space<vmem>>, vector<1x8x16xf32>
    %18 = vector.shape_cast %17 : vector<1x8x16xf32> to vector<8x16xf32>
    %c0_18 = arith.constant 0 : index
    %c0_19 = arith.constant 0 : index
    %c10 = arith.constant 10 : index
    %19 = vector.load %arg4[%c0_18, %c0_19, %c10] : memref<1x16x138xf32, #tpu.memory_space<vmem>>, vector<1x16x128xf32>
    %20 = vector.shape_cast %19 : vector<1x16x128xf32> to vector<16x128xf32>
    %cst_20 = arith.constant dense<0.000000e+00> : vector<8x128xf32>
    %21 = tpu.matmul %18, %20, %cst_20 {dimension_numbers = #tpu.dot_dimension_numbers<[1], [0], [0], [1], [0, 0, 1, 1], [], []>, precision = #tpu.contract_precision<fp32>} : vector<8x16xf32>, vector<16x128xf32>, vector<8x128xf32> -> vector<8x128xf32>
    %22 = arith.addf %16, %21 : vector<8x128xf32>
    %c0_21 = arith.constant 0 : index
    %c0_22 = arith.constant 0 : index
    %23 = vector.load %arg3[%c0_21, %c0_22] : memref<8x1xf32, #tpu.memory_space<vmem>>, vector<8x1xf32>
    %24 = vector.broadcast %23 : vector<8x1xf32> to vector<8x128xf32>
    %25 = arith.addf %22, %24 : vector<8x128xf32>
    %c0_23 = arith.constant 0 : index
    %c0_24 = arith.constant 0 : index
    %c0_25 = arith.constant 0 : index
    %26 = vector.load %arg5[%c0_23, %c0_24, %c0_25] : memref<1x8x128xf32, #tpu.memory_space<vmem>>, vector<1x8x128xf32>
    %27 = vector.shape_cast %26 : vector<1x8x128xf32> to vector<8x128xf32>
    %28 = vector.shape_cast %25 : vector<8x128xf32> to vector<1x8x128xf32>
    tpu.vector_store %arg5[%c0_23, %c0_24, %c0_25], %28 {strides = array<i32>} : memref<1x8x128xf32, #tpu.memory_space<vmem>>, vector<1x8x128xf32>,
    return
  }
  func.func @transform_0(%arg0: i32, %arg1: i32) -> (i32, i32, i32) {
    %c0_i32 = arith.constant 0 : i32
    %c0_i32_0 = arith.constant 0 : i32
    %c0_i32_1 = arith.constant 0 : i32
    %c0_i32_2 = arith.constant 0 : i32
    return %c0_i32, %c0_i32_0, %c0_i32_1 : i32, i32, i32
  }
  func.func @transform_1(%arg0: i32, %arg1: i32) -> (i32, i32) {
    %c0_i32 = arith.constant 0 : i32
    %c0_i32_0 = arith.constant 0 : i32
    %c0_i32_1 = arith.constant 0 : i32
    return %c0_i32, %c0_i32_0 : i32, i32
  }
  func.func @transform_2(%arg0: i32, %arg1: i32) -> (i32, i32, i32) {
    %c1_i32 = arith.constant 1 : i32
    %0 = arith.muli %arg0, %c1_i32 : i32
    %1 = arith.addi %0, %arg1 : i32
    %c0_i32 = arith.constant 0 : i32
    %c0_i32_0 = arith.constant 0 : i32
    %c0_i32_1 = arith.constant 0 : i32
    return %1, %c0_i32, %c0_i32_0 : i32, i32, i32
  }
  func.func @transform_3(%arg0: i32, %arg1: i32) -> (i32, i32, i32) {
    %c0_i32 = arith.constant 0 : i32
    %c0_i32_0 = arith.constant 0 : i32
    return %arg0, %c0_i32, %arg1 : i32, i32, i32
  }
}

</mosaic_0001>

<bundles_post_ra>
// kernel: tpu_custom_call.1
= control target key start
LH: loop header
LB: loop body
LE: loop exit
PB: predicated region body
PF: predicated region fallthrough
CT: control target
= control target key end

     0   :  { %8 = vsyncpa [#allocation3], 0  ;;  %s3221_s0 = inlined_call_operand.hbm [shape: f32[4,8,16], index: 0, kind: input, shape index: {}]   ;;  %s3222_s1 = inlined_call_operand.vmem [shape: f32[8,1], index: 1, kind: input, shape index: {}]   ;;  %s3223_s2 = inlined_call_operand.hbm [shape: f32[4,16,138], index: 2, kind: input, shape index: {}]   ;;  %s3224_s3 = inlined_call_operand.hbm [shape: f32[4,8,128], index: 3, kind: output, shape index: {}]  }
   0x1   :  { %9 = vsyncpa [#allocation6], 0 }
   0x2   :  { %11 = vsyncpa [#allocation6 + $0x1], 0 }
   0x3   :  { %12 = vsyncpa [#allocation4], 0 }
   0x4   :  { %14 = vsyncpa [#allocation4 + $0x1], 0  ;;  %s2836_s12 = smov 0   ;;  %s2838_s13 = smov 0  }
   0x5   :  { %s2840_s14 = smov 0   ;;  %s2842_s15 = smov 0  }
   0x6   :  { %s2844_s16 = smov 0   ;;  %s2846_s17 = smov 0  }
   0x7 LB: > { %s2242_s18 = sadd.s32 4294967295, %s2800_s17   ;;  %s2243_s19 = sadd.s32 4294967294, %s2800_s17   ;;  %s2800_s17 = sphi %s2846_s17, %s20_s17   ;;  %s2796_s16 = sphi %s2844_s16, %s3247_s16   ;;  %s2792_s15 = sphi %s2842_s15, %s3246_s15   ;;  %s2788_s14 = sphi %s2840_s14, %s3245_s14   ;;  %s2784_s13 = sphi %s2838_s13, %s3244_s13   ;;  %s2780_s12 = sphi %s2836_s12, %s3243_s12  }
   0x8   : > { %p96_p0 = scmp.ne.s32.totalorder %s2784_s13, %s2780_s12  ;;  %p2870_p1 = scmp.eq.s32.totalorder %s2242_s18, 0 }
   0x9   : > { %p2874_p2 = scmp.eq.s32.totalorder %s2242_s18, 3  ;;  %p128_p3 = scmp.eq.s32.totalorder %s2243_s19, 3 }
   0xa   : > { %s3229_s20 = scalar_select %p2870_p1, 1, 0 }
   0xb   : > { %s3230_s21 = scalar_select %p2874_p2, 1, 0 }
   0xc   : > { %p2880_p4 = por %p2870_p1, %p96_p0  ;;  %p2244_p5 = scmp.ge.s32.totalorder %s2800_s17, 1 }
   0xd   : > { %p2885_p6 = por %p128_p3, %p96_p0  ;;  %p135_p7 = scmp.lt.s32.totalorder %s2800_s17, 5 }
   0xe   : > { %s3231_s22 = scalar_select %p2880_p4, 1, 0 }
   0xf   : > { %s3232_s23 = scalar_select %p2885_p6, 1, 0 }
  0x10   : > { %p2890_p8 = pnand %p2244_p5, %p135_p7  ;;  %s2802_s25 = smov [#allocation2]  }
  0x11   : > { %s147_s26 = sshll.u32 %s2802_s25, 4  ;;  %s32_s28 = sadd.s32 1, %s2796_s16  ;;  %s148_s26 = int_to_ptr.vmem [resolvable:$true] %s147_s26 }
  0x12   : > { %s3233_s24 = scalar_select %p2890_p8, 1, 0 }
  0x13   : > { %p2579_p9 = pneg %p2890_p8  ;;  %s2656_s4 = scalar_lea.hbm %s3221_s0, 512 }
  0x14   : > { %p2657_p11 = scmp.ne.s32.totalorder %s3221_s0, %s2656_s4  ;;  %p2663_p3 = scmp.lt.u32.totalorder %s2656_s4, %s3221_s0 }
  0x15   : > { %p2898_p10 = pnand %p2579_p9, %p2870_p1 }
  0x17   : > { %p2658_p12 = pneg %p2898_p10 }
  0x19   : > { %p2659_p13 = pnand %p2658_p12, %p2657_p11 }
  0x1b   : > { %p2660_p0 = pneg %p2659_p13 }
  0x1d   : > { %p2665_p5 = pnand %p2663_p3, %p2660_p0 }
  0x1f   : > { %2668 = shalt.err (!%p2665_p5)
}
  0x20   : > { %s2669_s9 = scalar_lea.vmem %s148_s26, 512  ;;  %p2677_p4 = scmp.lt.s32.totalorder %s148_s26, %s148_s26 }
  0x21   : > { %p2670_p7 = scmp.ne.s32.totalorder %s148_s26, %s2669_s9  ;;  %p2678_p1 = scmp.lt.s32.totalorder %s2669_s9, %s2669_s9 }
  0x23   : > { %p2672_p9 = pnand %p2670_p7, %p2658_p12  ;;  %p2679_p8 = por %p2678_p1, %p2677_p4 }
  0x25   : > { %p2673_p6 = pneg %p2672_p9 }
  0x27   : > { %p2680_p2 = pnand %p2679_p8, %p2673_p6 }
  0x29   : > { %2683 = shalt.err (!%p2680_p2)
}
  0x2a   : > { %s2803_s10 = smov 128   ;;  %s2804_s11 = smov 8  }
  0x2b   : > { %2582 = dma.hbm_to_vmem [thread:$0]  (!%p2898_p10), %s3221_s0, 512, %s148_s26, [#allocation3], %s2803_s10, %s2803_s10, %s2804_s11  }
  0x2c   : > { %p34_p1 = scmp.ge.s32.totalorder %s32_s28, 4  ;;  %s83_s25 = sadd.s32 1, %s2788_s14 }
  0x2d   : > { %p90_p2 = scmp.ne.s32.totalorder %s2788_s14, %s2784_s13  ;;  %p91_p4 = scmp.eq.s32.totalorder %s2800_s17, 0 }
  0x2e   : > { %s3249_s28 = smov (%p34_p1, %s32_s28), 0  ;;  %p3236_p8 = scmp.ne.s32.totalorder %s3230_s21, 0 }
  0x2f   : > { %p2925_p6 = por %p91_p4, %p90_p2  ;;  %s80_s27 = ssub.s32 %s2796_s16, %s3249_s28 }
  0x30   : > { %p2931_p11 = por %p3236_p8, %p90_p2  ;;  %p2592_p12 = scmp.lt.s32.totalorder %s2800_s17, 4 }
  0x31   : > { %p81_p10 = scmp.eq.s32.totalorder %s80_s27, 0  ;;  %s164_s26 = sand.u32 1, %s2788_s14  }
  0x32   : > { %s2247_s4 = sshll.u32 %s164_s26, 5  ;;  %s2258_s6 = sshll.u32 %s2796_s16, 9 }
  0x33   : > { %s2940_s5 = scalar_select %p81_p10, %s2788_s14, %s83_s25  }
  0x34   : > { %s2946_s9 = scalar_lea.hbm %s3223_s2, %s2258_s6  ;;  %s168_s21 = scalar_lea.vmem [#allocation5], %s2247_s4 }
  0x35   : > { %s176_s10 = sshll.u32 %s168_s21, 4  ;;  %p2952_p13 = pnand %p2592_p12, %p2925_p6  ;;  %s2948_s10 = int_to_ptr.vmem [resolvable:$true] %s176_s10 }
  0x36   : > { %s2956_s18 = scalar_lea.sflag [#allocation6], %s164_s26  ;;  %s2684_s19 = scalar_lea.hbm %s2946_s9, 512 }
  0x37   : > { %p2685_p0 = scmp.ne.s32.totalorder %s2946_s9, %s2684_s19  ;;  %p2686_p3 = pneg %p2952_p13 }
  0x38   : > { %s2689_s29 = scalar_lea.hbm %s3223_s2, 2048  ;;  %p2690_p9 = scmp.lt.u32.totalorder %s2946_s9, %s3223_s2 }
  0x39   : > { %p2687_p5 = pnand %p2686_p3, %p2685_p0  ;;  %p2691_p1 = scmp.lt.u32.totalorder %s2689_s29, %s2684_s19 }
  0x3a   : > { %p2693_p4 = scmp.lt.u32.totalorder %s2684_s19, %s2946_s9 }
  0x3b   : > { %p2688_p7 = pneg %p2687_p5  ;;  %p2692_p2 = por %p2691_p1, %p2690_p9 }
  0x3d   : > { %p2694_p6 = por %p2693_p4, %p2692_p2 }
  0x3f   : > { %p2695_p8 = pnand %p2694_p6, %p2688_p7 }
  0x41   : > { %2698 = shalt.err (!%p2695_p8)
}
  0x42   : > { %s2699_s26 = scalar_lea.vmem %s2948_s10, 512  ;;  %s2805_s7 = smov [#allocation5]  }
  0x43   : > { %p2700_p12 = scmp.ne.s32.totalorder %s2948_s10, %s2699_s26  ;;  %s2704_s8 = sshll.u32 %s2805_s7, 4  ;;  %s2705_s8 = int_to_ptr.vmem [resolvable:$false] %s2704_s8 }
  0x44   : > { %s2706_s21 = scalar_lea.vmem %s2705_s8, 1024  ;;  %p2707_p5 = scmp.lt.s32.totalorder %s2948_s10, %s2705_s8 }
  0x45   : > { %p2702_p10 = pnand %p2700_p12, %p2686_p3  ;;  %p2708_p9 = scmp.lt.s32.totalorder %s2706_s21, %s2699_s26 }
  0x47   : > { %p2703_p0 = pneg %p2702_p10  ;;  %p2709_p1 = por %p2708_p9, %p2707_p5 }
  0x49   : > { %p2710_p2 = pnand %p2709_p1, %p2703_p0 }
  0x4b   : > { %2713 = shalt.err (!%p2710_p2)
}
  0x4c   : > { %s2806_s19 = smov 256   ;;  %s2807_s25 = smov 16  }
  0x4d   : > { %2586 = dma.hbm_to_vmem [thread:$0]  (!%p2952_p13), %s2946_s9, 512, %s2948_s10, %s2956_s18, %s2806_s19, %s2806_s19, %s2807_s25  }
  0x4e   : > { %p3239_p3 = scmp.ne.s32.totalorder %s3233_s24, 0 }
  0x4f   : > { %p3240_p7 = scmp.ne.s32.totalorder (!%p3239_p3), %s3229_s20, 0 }
  0x50   : > { %188 = sbr.rel (%p3239_p3) target bundleno = 506 (0x1fa), region = 32 }
  0x57   : > { %2767 = dma.done.wait (%p3240_p7), [#allocation3], 512  }
  0x58   : > { %2769 = vsyncadd (%p3240_p7), [#allocation3], 4294966784  ;;  %s2991_s27 = sand.u32 1, %s2784_s13   ;;  %p3241_p4 = scmp.ne.s32.totalorder %s3231_s22, 0 }
  0x59   : > { %s2252_s29 = sshll.u32 %s2991_s27, 5  ;;  %s195_s4 = scalar_lea.sflag [#allocation6], %s2991_s27 }
  0x5a   : > { %s198_s6 = scalar_lea.vmem [#allocation5], %s2252_s29 }
  0x5b   : > { %2771 = dma.done.wait (%p3241_p4), %s195_s4, 512  }
  0x5c   : > { %2773 = vsyncadd (%p3241_p4), %s195_s4, 4294966784  ;;  %v2808_v0 = vmov 0.0|0.0   ;;  %vm2809_vm0 = vmmov 0   ;;  %v2810_v1 = vmov 0.0   ;;  %v224_v2 = vld [vmem:[%s198_s6 + $0x10] sm:$0xff]  ;;  %v223_v3 = vld [vmem:[%s198_s6] sm:$0xff] }
  0x5d   : > { %2499 = vmatprep.subr.bf16.mxu0 %v2808_v0  ;;  %2502 = vmatprep.subr.bf16.mxu1 %v2808_v0  ;;  %s2811_s20 = smov 127   ;;  %v228_v4 = vld [vmem:[%s198_s6 + $0x18] sm:$0xff]  ;;  %v227_v5 = vld [vmem:[%s198_s6 + $0x8] sm:$0xff]  ;;  %v713_v6 = vand.u32 4294901760, %v223_v3  ;;  %v716_v7 = vand.u32 4294901760, %v224_v2  ;;  %s2812_s22 = smov 119  }
  0x5e   : > { %2335 = vmatprep.mubr.msk.f32.mxu0 %vm2809_vm0, %v2810_v1  ;;  %2342 = vmatprep.mubr.msk.f32.mxu1 %vm2809_vm0, %v2810_v1  ;;  %s2813_s24 = smov 118   ;;  %v2127_v20 = vld [vmem:[%s3222_s1] sm:$0xff]  ;;  %v2814_v21 = vmov 0   ;;  %v226_v22 = vld [vmem:[#allocation2 + $0x8] sm:$0xff]  ;;  %vm246_vm1 = vcmask 130048   ;;  %vm241_vm2 = vcmask 1039360  }
  0x5f   : > { %237 = vrot.lane.b32.xlu1 %v224_v2, %s2811_s20  ;;  %233 = vrot.lane.b32.xlu0 %v223_v3, %s2811_s20  ;;  %v3005_v8 = vpack.c.bf16 %v716_v7, %v713_v6  ;;  %v3007_v9 = vsub.f32 %v223_v3, %v713_v6  ;;  %v3009_v10 = vsub.f32 %v224_v2, %v716_v7  ;;  %v248_v23 = vsel %vm246_vm1, %v226_v22, 0  ;;  %v222_v26 = vld [vmem:[#allocation2] sm:$0xff]  ;;  %v1172_v48 = vld [vmem:[#allocation2 + $0x10] sm:$0xff]  ;;  %s2253_s11 = sshll.u32 %s2991_s27, 3  ;;  %s2255_s18 = sshll.u32 %s2792_s15, 7 }
  0x60   : > { %2655 = vset.pattern.permute.xlu0 %v2814_v21  ;;  %v3025_v24 = vand.u32 4294901760, %v248_v23  ;;  %v710_v30 = vsel %vm246_vm1, %v222_v26, 0  ;;  %vm1181_vm3 = vcmask 973824   ;;  %v1187_v57 = vsel %vm246_vm1, %v1172_v48, 0  ;;  %s220_s26 = scalar_lea.vmem [#allocation7], %s2253_s11  ;;  %s3173_s19 = scalar_lea.hbm %s3224_s3, %s2255_s18 }
  0x61   : > { %v792_v11 = vand.u32 4294901760, %v3007_v9  ;;  %v799_v12 = vand.u32 4294901760, %v3009_v10  ;;  %v2524_v13 = vpack.c.bf16 %v3009_v10, %v3007_v9  ;;  %v3035_v36 = vand.u32 4294901760, %v710_v30  ;;  %s2150_s7 = sshll.u32 %s220_s26, 4  ;;  %s2136_s25 = scalar_lea.sflag [#allocation4], %s2991_s27  ;;  %s3175_s7 = int_to_ptr.vmem [resolvable:$true] %s2150_s7 }
  0x62   : > { %v3028_v25 = vsub.f32 %v248_v23, %v3025_v24  ;;  %v3050_v63 = vand.u32 4294901760, %v1187_v57  ;;  %vm1659_vm4 = vcmask 965632   ;;  %s2714_s29 = scalar_lea.vmem %s3175_s7, 128  ;;  %s2815_s15 = smov [#allocation7]  }
  0x63   : > { %239 = vrot.lane.b32.xlu1 %v228_v4, %s2811_s20  ;;  %235 = vrot.lane.b32.xlu0 %v227_v5, %s2811_s20  ;;  %v793_v14 = vsub.f32 %v3007_v9, %v792_v11  ;;  %v800_v15 = vsub.f32 %v3009_v10, %v799_v12  ;;  %v3019_v19 = vpack.c.bf16 %v799_v12, %v792_v11  ;;  %v1650_v12 = vld [vmem:[#allocation2 + $0x18] sm:$0xff]  ;;  %p2715_p13 = scmp.ne.s32.totalorder %s3175_s7, %s2714_s29  ;;  %s2718_s4 = sshll.u32 %s2815_s15, 4  ;;  %s2719_s4 = int_to_ptr.vmem [resolvable:$false] %s2718_s4 }
  0x64   : > { %v319_v29 = vand.u32 4294901760, %v3028_v25  ;;  %v3038_v45 = vsub.f32 %v710_v30, %v3035_v36  ;;  %v3059_v7 = vsub.f32 %v1187_v57, %v3050_v63  ;;  %s2720_s6 = scalar_lea.vmem %s2719_s4, 256  ;;  %p2721_p12 = scmp.lt.s32.totalorder %s3175_s7, %s2719_s4 }
  0x65   : > { %v794_v16 = vand.u32 4294901760, %v793_v14  ;;  %v801_v17 = vand.u32 4294901760, %v800_v15  ;;  %p2716_p6 = pnand %p2715_p13, %p2931_p11  ;;  %p2722_p10 = scmp.lt.s32.totalorder %s2720_s6, %s2714_s29 }
  0x66   : > { %v320_v35 = vsub.f32 %v3028_v25, %v319_v29  ;;  %v781_v52 = vand.u32 4294901760, %v3038_v45  ;;  %v1258_v15 = vand.u32 4294901760, %v3059_v7 }
  0x67   : > { %1175 = vrot.lane.b32.xlu1 %v227_v5, %s2812_s22  ;;  %1173 = vrot.lane.b32.xlu0 %v223_v3, %s2812_s22  ;;  %v3017_v18 = vpack.c.bf16 %v801_v17, %v794_v16  ;;  %p2717_p8 = pneg %p2716_p6  ;;  %p2723_p0 = por %p2722_p10, %p2721_p12 }
  0x68   : > { %v321_v44 = vand.u32 4294901760, %v320_v35  ;;  %v782_v62 = vsub.f32 %v3038_v45, %v781_v52 }
  0x69   : > { %p2724_p5 = pnand %p2723_p0, %p2717_p8 }
  0x6a   : > { %v783_v6 = vand.u32 4294901760, %v782_v62 }
  0x6b   : > { %1179 = vrot.lane.b32.xlu1 %v228_v4, %s2812_s22  ;;  %1177 = vrot.lane.b32.xlu0 %v224_v2, %s2812_s22 }
  0x6f   : > { %1653 = vrot.lane.b32.xlu1 %v227_v5, %s2813_s24  ;;  %1651 = vrot.lane.b32.xlu0 %v223_v3, %s2813_s24 }
  0x73   : > { %1657 = vrot.lane.b32.xlu1 %v228_v4, %s2813_s24  ;;  %1655 = vrot.lane.b32.xlu0 %v224_v2, %s2813_s24 }
  0x77   : > { %2130 = vperm.xlu0 %2655, %v2127_v20   ;;  %v1665_v20 = vsel %vm246_vm1, %v1650_v12, 0 }
  0x78   : > { %v3092_v23 = vand.u32 4294901760, %v1665_v20 }
  0xd1   : > { %v238_v27 = vpop.permute.xlu1 %237  ;;  %v234_v28 = vpop.permute.xlu0 %233 }
  0xd5   : > { %v240_v31 = vpop.permute.xlu1 %239  ;;  %v236_v32 = vpop.permute.xlu0 %235 }
  0xd6   : > { %v243_v33 = vsel %vm241_vm2, %v238_v27, %v240_v31  ;;  %v242_v34 = vsel %vm241_vm2, %v234_v28, %v236_v32 }
  0xd7   : > { %v254_v37 = vand.u32 4294901760, %v243_v33  ;;  %v251_v38 = vand.u32 4294901760, %v242_v34 }
  0xd9   : > { %v336_v39 = vsub.f32 %v243_v33, %v254_v37  ;;  %v329_v40 = vsub.f32 %v242_v34, %v251_v38  ;;  %v2500_v41 = vpack.c.bf16 %v254_v37, %v251_v38  ;;  %v1176_v42 = vpop.permute.xlu1 %1175  ;;  %v1174_v43 = vpop.permute.xlu0 %1173 }
  0xda   : > { %v1182_v58 = vsel %vm1181_vm3, %v1174_v43, %v1176_v42 }
  0xdb   : > { %2501 = vmatpush3.bf16.msra.mxu0 %v2500_v41  ;;  %v330_v46 = vand.u32 4294901760, %v329_v40  ;;  %v337_v47 = vand.u32 4294901760, %v336_v39  ;;  %v2506_v49 = vpack.c.bf16 %v336_v39, %v329_v40  ;;  %v1190_v2 = vand.u32 4294901760, %v1182_v58 }
  0xdc   : > { %2505 = vmatprep.subr.bf16.mxu0 %v2808_v0 }
  0xdd   : > { %v331_v50 = vsub.f32 %v329_v40, %v330_v46  ;;  %v338_v51 = vsub.f32 %v336_v39, %v337_v47  ;;  %v1180_v55 = vpop.permute.xlu1 %1179  ;;  %v1178_v56 = vpop.permute.xlu0 %1177  ;;  %v2512_v60 = vpack.c.bf16 %v337_v47, %v330_v46  ;;  %v3062_v11 = vsub.f32 %v1182_v58, %v1190_v2 }
  0xde   : > { %2336 = vmatmul.mubr.f32.vlgmr.msra.gmra.mrb[0].mxu0 %v321_v44  ;;  %v1183_v61 = vsel %vm1181_vm3, %v1178_v56, %v1180_v55 }
  0xdf   : > { %2507 = vmatpush3.bf16.msra.mxu0 %v2506_v49  ;;  %2349 = vmatprep.mubr.msk.f32.mxu0 %vm2809_vm0, %v2810_v1  ;;  %v332_v53 = vand.u32 4294901760, %v331_v50  ;;  %v339_v54 = vand.u32 4294901760, %v338_v51  ;;  %v1193_v3 = vand.u32 4294901760, %v1183_v61  ;;  %v1269_v21 = vand.u32 4294901760, %v3062_v11 }
  0xe0   : > { %2511 = vmatprep.subr.bf16.mxu0 %v2808_v0 }
  0xe1   : > { %v2503_v59 = vpack.c.bf16 %v339_v54, %v332_v53  ;;  %v1654_v4 = vpop.permute.xlu1 %1653  ;;  %v1652_v5 = vpop.permute.xlu0 %1651  ;;  %v3067_v14 = vsub.f32 %v1183_v61, %v1193_v3 }
  0xe2   : > { %2350 = vmatmul.mubr.f32.vlgmr.msra.gmra.mrb[2].mxu0 %v3028_v25  ;;  %v1660_v9 = vsel %vm1659_vm4, %v1652_v5, %v1654_v4  ;;  %v1270_v25 = vsub.f32 %v3062_v11, %v1269_v21 }
  0xe3   : > { %2504 = vmatpush3.bf16.msra.mxu1 %v2503_v59  ;;  %2513 = vmatpush3.bf16.msra.mxu0 %v2512_v60  ;;  %v1276_v22 = vand.u32 4294901760, %v3067_v14  ;;  %v1668_v27 = vand.u32 4294901760, %v1660_v9  ;;  %v2542_v31 = vpack.c.bf16 %v3067_v14, %v3062_v11 }
  0xe4   : > { %2508 = vmatprep.subr.bf16.mxu1 %v2808_v0  ;;  %2363 = vmatprep.mubr.msk.f32.mxu0 %vm2809_vm0, %v2810_v1 }
  0xe5   : > { %2517 = vmatprep.subr.bf16.mxu0 %v2808_v0  ;;  %v1658_v16 = vpop.permute.xlu1 %1657  ;;  %v1656_v17 = vpop.permute.xlu0 %1655  ;;  %v1277_v26 = vsub.f32 %v3067_v14, %v1276_v22  ;;  %v1746_v32 = vsub.f32 %v1660_v9, %v1668_v27  ;;  %v2548_v39 = vpack.c.bf16 %v1276_v22, %v1269_v21 }
  0xe6   : > { %2343 = vmatmul.mubr.f32.vlgmr.msra.gmra.mrb[0].mxu1 %v3025_v24  ;;  %2364 = vmatmul.mubr.f32.vlgmr.msra.gmra.mrb[4].mxu0 %v3025_v24  ;;  %v1661_v10 = vsel %vm1659_vm4, %v1656_v17, %v1658_v16 }
  0xe7   : > { %2510 = vmatpush3.bf16.msra.mxu1 %v2500_v41  ;;  %2519 = vmatpush3.bf16.msra.mxu0 %v3005_v8  ;;  %v1671_v28 = vand.u32 4294901760, %v1661_v10  ;;  %v1278_v30 = vand.u32 4294901760, %v1277_v26  ;;  %v1747_v35 = vand.u32 4294901760, %v1746_v32 }
  0xe8   : > { %2356 = vmatprep.mubr.msk.f32.mxu1 %vm2809_vm0, %v2810_v1  ;;  %2514 = vmatprep.subr.bf16.mxu1 %v2808_v0 }
  0xe9   : > { %2377 = vmatprep.mubr.msk.f32.mxu0 %vm2809_vm0, %v2810_v1  ;;  %2523 = vmatprep.subr.bf16.mxu0 %v2808_v0  ;;  %v1753_v33 = vsub.f32 %v1661_v10, %v1671_v28  ;;  %v1748_v40 = vsub.f32 %v1746_v32, %v1747_v35 }
  0xea   : > { %2357 = vmatmul.mubr.f32.vlgmr.msra.gmra.mrb[2].mxu1 %v319_v29  ;;  %2378 = vmatmul.mubr.f32.vlgmr.msra.gmra.mrb[6].mxu0 %v783_v6  ;;  %v1271_v29 = vand.u32 4294901760, %v1270_v25 }
  0xeb   : > { %2516 = vmatpush3.bf16.msra.mxu1 %v2500_v41  ;;  %2525 = vmatpush3.bf16.msra.mxu0 %v2524_v13  ;;  %v1259_v13 = vsub.f32 %v3059_v7, %v1258_v15  ;;  %v1754_v37 = vand.u32 4294901760, %v1753_v33  ;;  %v2554_v41 = vpack.c.bf16 %v1671_v28, %v1668_v27  ;;  %v1749_v43 = vand.u32 4294901760, %v1748_v40 }
  0xec   : > { %2370 = vmatprep.mubr.msk.f32.mxu1 %vm2809_vm0, %v2810_v1  ;;  %2520 = vmatprep.subr.bf16.mxu1 %v2808_v0  ;;  %v2539_v38 = vpack.c.bf16 %v1278_v30, %v1271_v29 }
  0xed   : > { %2391 = vmatprep.mubr.msk.f32.mxu0 %vm2809_vm0, %v2810_v1  ;;  %2529 = vmatprep.subr.bf16.mxu0 %v2808_v0  ;;  %v1755_v42 = vsub.f32 %v1753_v33, %v1754_v37  ;;  %v2566_v47 = vpack.c.bf16 %v1754_v37, %v1747_v35 }
  0xee   : > { %2371 = vmatmul.mubr.f32.vlgmr.msra.gmra.mrb[4].mxu1 %v3025_v24  ;;  %2392 = vmatmul.mubr.f32.vlgmr.msra.gmra.mrb[8].mxu0 %v3038_v45  ;;  %v2536_v24 = vpack.c.bf16 %v1193_v3, %v1190_v2  ;;  %v2560_v45 = vpack.c.bf16 %v1753_v33, %v1746_v32 }
  0xef   : > { %2522 = vmatpush3.bf16.msra.mxu1 %v3017_v18  ;;  %2531 = vmatpush3.bf16.msra.mxu0 %v3019_v19  ;;  %v1260_v18 = vand.u32 4294901760, %v1259_v13  ;;  %v3107_v19 = vsub.f32 %v1665_v20, %v3092_v23  ;;  %v1756_v44 = vand.u32 4294901760, %v1755_v42 }
  0xf0   : > { %2384 = vmatprep.mubr.msk.f32.mxu1 %vm2809_vm0, %v2810_v1  ;;  %2526 = vmatprep.subr.bf16.mxu1 %v2808_v0 }
  0xf1   : > { %2405 = vmatprep.mubr.msk.f32.mxu0 %vm2809_vm0, %v2810_v1  ;;  %2535 = vmatprep.subr.bf16.mxu0 %v2808_v0  ;;  %v1736_v34 = vand.u32 4294901760, %v3107_v19  ;;  %v2557_v46 = vpack.c.bf16 %v1756_v44, %v1749_v43 }
  0xf2   : > { %2385 = vmatmul.mubr.f32.vlgmr.msra.gmra.mrb[6].mxu1 %v3035_v36  ;;  %2406 = vmatmul.mubr.f32.vlgmr.msra.gmra.mrb[10].mxu0 %v3035_v36 }
  0xf3   : > { %2528 = vmatpush3.bf16.msra.mxu1 %v3005_v8  ;;  %2537 = vmatpush3.bf16.msra.mxu0 %v2536_v24 }
  0xf4   : > { %2398 = vmatprep.mubr.msk.f32.mxu1 %vm2809_vm0, %v2810_v1  ;;  %2532 = vmatprep.subr.bf16.mxu1 %v2808_v0 }
  0xf5   : > { %2419 = vmatprep.mubr.msk.f32.mxu0 %vm2809_vm0, %v2810_v1  ;;  %2541 = vmatprep.subr.bf16.mxu0 %v2808_v0 }
  0xf6   : > { %2399 = vmatmul.mubr.f32.vlgmr.msra.gmra.mrb[8].mxu1 %v781_v52  ;;  %2420 = vmatmul.mubr.f32.vlgmr.msra.gmra.mrb[12].mxu0 %v1260_v18 }
  0xf7   : > { %2534 = vmatpush3.bf16.msra.mxu1 %v3005_v8  ;;  %2543 = vmatpush3.bf16.msra.mxu0 %v2542_v31  ;;  %v1737_v8 = vsub.f32 %v3107_v19, %v1736_v34 }
  0xf8   : > { %2412 = vmatprep.mubr.msk.f32.mxu1 %vm2809_vm0, %v2810_v1  ;;  %2538 = vmatprep.subr.bf16.mxu1 %v2808_v0 }
  0xf9   : > { %2433 = vmatprep.mubr.msk.f32.mxu0 %vm2809_vm0, %v2810_v1  ;;  %2547 = vmatprep.subr.bf16.mxu0 %v2808_v0 }
  0xfa   : > { %2413 = vmatmul.mubr.f32.vlgmr.msra.gmra.mrb[10].mxu1 %v3035_v36  ;;  %2434 = vmatmul.mubr.f32.vlgmr.msra.gmra.mrb[14].mxu0 %v3059_v7  ;;  %v1738_v36 = vand.u32 4294901760, %v1737_v8 }
  0xfb   : > { %2540 = vmatpush3.bf16.msra.mxu1 %v2539_v38  ;;  %2549 = vmatpush3.bf16.msra.mxu0 %v2548_v39 }
  0xfc   : > { %2426 = vmatprep.mubr.msk.f32.mxu1 %vm2809_vm0, %v2810_v1  ;;  %2544 = vmatprep.subr.bf16.mxu1 %v2808_v0 }
  0xfd   : > { %2447 = vmatprep.mubr.msk.f32.mxu0 %vm2809_vm0, %v2810_v1  ;;  %2553 = vmatprep.subr.bf16.mxu0 %v2808_v0 }
  0xfe   : > { %2427 = vmatmul.mubr.f32.vlgmr.msra.gmra.mrb[12].mxu1 %v3050_v63  ;;  %2448 = vmatmul.mubr.f32.vlgmr.msra.gmra.mrb[16].mxu0 %v3050_v63 }
  0xff   : > { %2546 = vmatpush3.bf16.msra.mxu1 %v2536_v24  ;;  %2555 = vmatpush3.bf16.msra.mxu0 %v2554_v41 }
 0x100   : > { %2440 = vmatprep.mubr.msk.f32.mxu1 %vm2809_vm0, %v2810_v1  ;;  %2550 = vmatprep.subr.bf16.mxu1 %v2808_v0 }
 0x101   : > { %2461 = vmatprep.mubr.msk.f32.mxu0 %vm2809_vm0, %v2810_v1  ;;  %2559 = vmatprep.subr.bf16.mxu0 %v2808_v0 }
 0x102   : > { %2441 = vmatmul.mubr.f32.vlgmr.msra.gmra.mrb[14].mxu1 %v1258_v15  ;;  %2462 = vmatmul.mubr.f32.vlgmr.msra.gmra.mrb[18].mxu0 %v1738_v36 }
 0x103   : > { %2552 = vmatpush3.bf16.msra.mxu1 %v2536_v24  ;;  %2561 = vmatpush3.bf16.msra.mxu0 %v2560_v45 }
 0x104   : > { %2454 = vmatprep.mubr.msk.f32.mxu1 %vm2809_vm0, %v2810_v1  ;;  %2556 = vmatprep.subr.bf16.mxu1 %v2808_v0 }
 0x105   : > { %2475 = vmatprep.mubr.msk.f32.mxu0 %vm2809_vm0, %v2810_v1  ;;  %2565 = vmatprep.subr.bf16.mxu0 %v2808_v0 }
 0x106   : > { %2455 = vmatmul.mubr.f32.vlgmr.msra.gmra.mrb[16].mxu1 %v3050_v63  ;;  %2476 = vmatmul.mubr.f32.vlgmr.msra.gmra.mrb[20].mxu0 %v3107_v19 }
 0x107   : > { %2558 = vmatpush3.bf16.msra.mxu1 %v2557_v46  ;;  %2567 = vmatpush3.bf16.msra.mxu0 %v2566_v47 }
 0x108   : > { %2468 = vmatprep.mubr.msk.f32.mxu1 %vm2809_vm0, %v2810_v1  ;;  %2562 = vmatprep.subr.bf16.mxu1 %v2808_v0 }
 0x109   : > { %2489 = vmatprep.mubr.msk.f32.mxu0 %vm2809_vm0, %v2810_v1 }
 0x10a   : > { %2469 = vmatmul.mubr.f32.vlgmr.msra.gmra.mrb[18].mxu1 %v3092_v23  ;;  %2490 = vmatmul.mubr.f32.vlgmr.msra.gmra.mrb[22].mxu0 %v3092_v23 }
 0x10b   : > { %2564 = vmatpush3.bf16.msra.mxu1 %v2554_v41  ;;  %2482 = vmatprep.mubr.msk.f32.mxu1 %vm2809_vm0, %v2810_v1 }
 0x10c   : > { %2568 = vmatprep.subr.bf16.mxu1 %v2808_v0 }
 0x10e   : > { %2483 = vmatmul.mubr.f32.vlgmr.msra.gmra.mrb[20].mxu1 %v1736_v34 }
 0x10f   : > { %2570 = vmatpush3.bf16.msra.mxu1 %v2554_v41  ;;  %2496 = vmatprep.mubr.msk.f32.mxu1 %vm2809_vm0, %v2810_v1 }
 0x112   : > { %2497 = vmatmul.mubr.f32.vlgmr.msra.gmra.mrb[22].mxu1 %v3092_v23 }
 0x1b1   : > { %v323_v48 = vpop.f32.mrb[0].mxu0 }
 0x1b2   : > { %v2337_v49 = vpop.f32.mrb[1].mxu0 }
 0x1b5   : > { %v480_v50 = vpop.f32.mrb[2].mxu0 }
 0x1b6   : > { %v2351_v51 = vpop.f32.mrb[3].mxu0 }
 0x1b9   : > { %v404_v52 = vpop.f32.mrb[0].mxu1  ;;  %v632_v53 = vpop.f32.mrb[4].mxu0 }
 0x1ba   : > { %v405_v54 = vadd.f32 %v404_v52, %v323_v48  ;;  %v2344_v55 = vpop.f32.mrb[1].mxu1  ;;  %v2365_v56 = vpop.f32.mrb[5].mxu0 }
 0x1bc   : > { %v481_v57 = vadd.f32 %v480_v50, %v405_v54  ;;  %v2131_v54 = vpop.permute.xlu0 %2130 }
 0x1bd   : > { %v555_v58 = vpop.f32.mrb[2].mxu1  ;;  %v785_v59 = vpop.f32.mrb[6].mxu0 }
 0x1be   : > { %v556_v0 = vadd.f32 %v555_v58, %v481_v57  ;;  %v2358_v60 = vpop.f32.mrb[3].mxu1  ;;  %v2379_v61 = vpop.f32.mrb[7].mxu0 }
 0x1c0   : > { %v633_v62 = vadd.f32 %v632_v53, %v556_v0 }
 0x1c1   : > { %v705_v63 = vpop.f32.mrb[4].mxu1  ;;  %v942_v1 = vpop.f32.mrb[8].mxu0 }
 0x1c2   : > { %v706_v2 = vadd.f32 %v705_v63, %v633_v62  ;;  %v2372_v3 = vpop.f32.mrb[5].mxu1  ;;  %v2393_v4 = vpop.f32.mrb[9].mxu0 }
 0x1c4   : > { %v786_v5 = vadd.f32 %v785_v59, %v706_v2 }
 0x1c5   : > { %v866_v6 = vpop.f32.mrb[6].mxu1  ;;  %v1094_v7 = vpop.f32.mrb[10].mxu0 }
 0x1c6   : > { %v867_v11 = vadd.f32 %v866_v6, %v786_v5  ;;  %v2386_v12 = vpop.f32.mrb[7].mxu1  ;;  %v2407_v14 = vpop.f32.mrb[11].mxu0 }
 0x1c8   : > { %v943_v15 = vadd.f32 %v942_v1, %v867_v11 }
 0x1c9   : > { %v1017_v16 = vpop.f32.mrb[8].mxu1  ;;  %v1262_v17 = vpop.f32.mrb[12].mxu0 }
 0x1ca   : > { %v1018_v20 = vadd.f32 %v1017_v16, %v943_v15  ;;  %v2400_v21 = vpop.f32.mrb[9].mxu1  ;;  %v2421_v22 = vpop.f32.mrb[13].mxu0 }
 0x1cc   : > { %v1095_v9 = vadd.f32 %v1094_v7, %v1018_v20 }
 0x1cd   : > { %v1167_v10 = vpop.f32.mrb[10].mxu1  ;;  %v1419_v13 = vpop.f32.mrb[14].mxu0 }
 0x1ce   : > { %v1168_v23 = vadd.f32 %v1167_v10, %v1095_v9  ;;  %v2414_v25 = vpop.f32.mrb[11].mxu1  ;;  %v2435_v24 = vpop.f32.mrb[15].mxu0 }
 0x1d1   : > { %v1343_v26 = vpop.f32.mrb[12].mxu1  ;;  %v1571_v27 = vpop.f32.mrb[16].mxu0 }
 0x1d2   : > { %v1344_v28 = vadd.f32 %v1343_v26, %v1262_v17  ;;  %v2428_v18 = vpop.f32.mrb[13].mxu1  ;;  %v2449_v19 = vpop.f32.mrb[17].mxu0 }
 0x1d4   : > { %v1420_v29 = vadd.f32 %v1419_v13, %v1344_v28 }
 0x1d5   : > { %v1494_v30 = vpop.f32.mrb[14].mxu1  ;;  %v1740_v31 = vpop.f32.mrb[18].mxu0 }
 0x1d6   : > { %v1495_v32 = vadd.f32 %v1494_v30, %v1420_v29  ;;  %v2442_v33 = vpop.f32.mrb[15].mxu1  ;;  %v2463_v34 = vpop.f32.mrb[19].mxu0 }
 0x1d8   : > { %v1572_v35 = vadd.f32 %v1571_v27, %v1495_v32 }
 0x1d9   : > { %v1644_v37 = vpop.f32.mrb[16].mxu1  ;;  %v1897_v38 = vpop.f32.mrb[20].mxu0 }
 0x1da   : > { %v1645_v39 = vadd.f32 %v1644_v37, %v1572_v35  ;;  %v2456_v8 = vpop.f32.mrb[17].mxu1  ;;  %v2477_v40 = vpop.f32.mrb[21].mxu0 }
 0x1dc   : > { %v1648_v41 = vadd.f32 %v1645_v39, %v1168_v23 }
 0x1dd   : > { %v1821_v42 = vpop.f32.mrb[18].mxu1  ;;  %v2049_v36 = vpop.f32.mrb[22].mxu0 }
 0x1de   : > { %v1822_v43 = vadd.f32 %v1821_v42, %v1740_v31  ;;  %v2470_v44 = vpop.f32.mrb[19].mxu1  ;;  %v2491_v45 = vpop.f32.mrb[23].mxu0 }
 0x1e0   : > { %v1898_v46 = vadd.f32 %v1897_v38, %v1822_v43 }
 0x1e1   : > { %v1972_v47 = vpop.f32.mrb[20].mxu1 }
 0x1e2   : > { %v1973_v48 = vadd.f32 %v1972_v47, %v1898_v46  ;;  %v2484_v49 = vpop.f32.mrb[21].mxu1 }
 0x1e4   : > { %v2050_v50 = vadd.f32 %v2049_v36, %v1973_v48 }
 0x1e5   : > { %v2122_v51 = vpop.f32.mrb[22].mxu1 }
 0x1e6   : > { %v2123_v52 = vadd.f32 %v2122_v51, %v2050_v50  ;;  %v2498_v53 = vpop.f32.mrb[23].mxu1 }
 0x1e8   : > { %v2126_v55 = vadd.f32 %v2123_v52, %v1648_v41 }
 0x1ea   : > { %v2133_v56 = vadd.f32 %v2131_v54, %v2126_v55 }
 0x1ec   : > { %2134 = vst [vmem:[%s220_s26] sm:$0xff] %v2133_v56 }
 0x1ed   : > { %2727 = shalt.err (!%p2724_p5)
}
 0x1ee   : > { %s2728_s27 = scalar_lea.hbm %s3173_s19, 128  ;;  %s2732_s24 = scalar_lea.hbm %s3224_s3, 512 }
 0x1ef   : > { %p2729_p9 = scmp.ne.s32.totalorder %s3173_s19, %s2728_s27  ;;  %p2733_p3 = scmp.lt.u32.totalorder %s3173_s19, %s3224_s3 }
 0x1f0   : > { %p2734_p7 = scmp.lt.u32.totalorder %s2732_s24, %s2728_s27  ;;  %p2736_p13 = scmp.lt.u32.totalorder %s2728_s27, %s3173_s19 }
 0x1f1   : > { %p2730_p1 = pnand %p2729_p9, %p2931_p11 }
 0x1f2   : > { %p2735_p4 = por %p2734_p7, %p2733_p3 }
 0x1f3   : > { %p2731_p2 = pneg %p2730_p1 }
 0x1f4   : > { %p2737_p6 = por %p2736_p13, %p2735_p4 }
 0x1f6   : > { %p2738_p8 = pnand %p2737_p6, %p2731_p2 }
 0x1f8   : > { %2741 = shalt.err (!%p2738_p8)
}
 0x1f9   : > { %2577 = dma.vmem_to_hbm [thread:$0]  (%p2931_p11), %s3175_s7, 128, %s3173_s19, %s2136_s25  }
 0x1fa PF: > { %p2594_p12 = scmp.ge.s32.totalorder %s2800_s17, 2  ;;  %s2162_s11 = sand.u32 1, %s2780_s12  }
 0x1fb   : > { %p3242_p10 = scmp.ne.s32.totalorder %s3232_s23, 0  ;;  %s2163_s18 = scalar_lea.sflag [#allocation4], %s2162_s11 }
 0x1fd   : > { %p2588_p0 = pnand %p2594_p12, %p3242_p10 }
 0x1ff   : > { %2775 = dma.done.wait (!%p2588_p0), %s2163_s18, 128  }
 0x200   : > { %2777 = vsyncadd (!%p2588_p0), %s2163_s18, 4294967168  ;;  %s20_s17 = sadd.s32 1, %s2800_s17   ;;  %s3243_s12 = smov %s2784_s13 }
 0x201   : > { %p17_p5 = scmp.ge.s32.totalorder %s20_s17, 6   ;;  %s3244_s13 = smov %s2788_s14 }
 0x202   : > { %s3245_s14 = smov %s2940_s5  ;;  %s3246_s15 = smov %s2796_s16 }
 0x203   : > { %s3247_s16 = smov %s3249_s28  ;;  %19 = sbr.rel (!%p17_p5) target bundleno = 7 (0x7), region = 85 }
 0x20a   :  { %2168 = vsyncpa [#allocation3], 1 }
 0x20b   :  { %2170 = vsyncpa [#allocation3 + $0x1], 1 }
 0x20c   :  { %2171 = vsyncpa [#allocation6], 1 }
 0x20d   :  { %2173 = vsyncpa [#allocation6 + $0x1], 1 }
 0x20e   :  { %2174 = vsyncpa [#allocation4], 1 }
 0x20f   :  { %2176 = vsyncpa [#allocation4 + $0x1], 1 }

</bundles_post_ra>
